<compile_context>
chip_gen: v7x
topology: tpu7x:2x2x1
jax: 0.10.0
libtpu: 0.0.40
codegen_flags: <defaults>
</compile_context>

<pallas_src>
import functools

import jax
import jax.numpy as jnp
from jax import lax
from jax.experimental import pallas as pl
from jax.experimental.pallas import tpu as pltpu

LN_EPS = 1e-5  # torch.nn.LayerNorm default


def _silu(x):
    return x * jax.nn.sigmoid(x)


def _layernorm_fast(x, gamma, beta):
    # var = E[x^2] - mu^2 : the two cross-lane reductions are independent and can
    # overlap (XLU slot), unlike mean((x - mu)**2). Numerically equivalent at f32.
    mu = jnp.mean(x, axis=-1, keepdims=True)
    ex2 = jnp.mean(x * x, axis=-1, keepdims=True)
    var = ex2 - mu * mu
    return (x - mu) * lax.rsqrt(var + LN_EPS) * gamma + beta


def _layernorm_ref(x, gamma, beta):
    mu = jnp.mean(x, axis=-1, keepdims=True)
    var = jnp.mean((x - mu) ** 2, axis=-1, keepdims=True)
    return (x - mu) * lax.rsqrt(var + LN_EPS) * gamma + beta


def linear_resnet_block_kernel(
    x_ref,        # (TB, in_dim)
    emb_ref,      # (TB, mlp_dim)
    w_mlp_ref,    # (mlp_dim, 2*out_dim)   [w_scale | w_shift]
    w_xcat_ref,   # (in_dim, 2*out_dim)    [w1 | wr]   (block1 proj + res proj fused)
    w2_ref,       # (out_dim, out_dim)
    vec_ref,      # (8, 2*out_dim)          packed bias / LayerNorm vectors
    out_ref,      # (TB, out_dim)
    *,
    out_dim: int,
):
    x = x_ref[...]
    emb = emb_ref[...]
    vecs = vec_ref[...]

    # unpack the small-vector slab with static slices (no extra DMAs)
    b_mlp = vecs[0:1, :]                  # [b_scale | b_shift]
    b_xcat = vecs[1:2, :]                 # [b1 | br]
    g1 = vecs[2:3, :out_dim]
    be1 = vecs[2:3, out_dim:]
    g2 = vecs[3:4, :out_dim]
    be2 = vecs[3:4, out_dim:]
    b2 = vecs[4:5, :out_dim]

    # --- self.mlp = Sequential(SiLU, Linear(mlp_dim, 2*out_dim)) ---
    # single lane-dense N = 2*out_dim matmul, split into scale / shift afterwards
    e = _silu(emb)
    ss = jnp.dot(e, w_mlp_ref[...], preferred_element_type=jnp.float32) + b_mlp
    scale = ss[:, :out_dim]
    shift = ss[:, out_dim:]

    # --- block1 proj and res_proj share LHS x -> one fused lane-dense matmul ---
    xw = jnp.dot(x, w_xcat_ref[...], preferred_element_type=jnp.float32) + b_xcat
    h1 = xw[:, :out_dim]        # block1 Linear output
    res = xw[:, out_dim:]       # res_proj output

    # --- block1: LayerNorm -> scale/shift -> SiLU -> Dropout(p=0) = identity ---
    h = _layernorm_fast(h1, g1, be1)
    h = h * (scale + 1.0) + shift
    h = _silu(h)

    # --- block2: Linear -> LayerNorm -> SiLU ---
    h2 = jnp.dot(h, w2_ref[...], preferred_element_type=jnp.float32) + b2
    h2 = _layernorm_fast(h2, g2, be2)
    h2 = _silu(h2)

    # --- residual add ---
    out_ref[...] = (h2 + res).astype(out_ref.dtype)


def linear_resnet_block(x, time_emb, params, *, block_b: int = 256):
    """Batch-tiled pallas_call. Weights stay VMEM-resident across batch tiles."""
    B, in_dim = x.shape
    mlp_dim = time_emb.shape[1]
    out_dim = params["w1"].shape[1]
    n2 = 2 * out_dim

    # fused / packed parameter views (tiny one-time XLA work outside the kernel)
    w_mlp = params["w_mlp"]                                           # (mlp_dim, 2*out_dim)
    w_xcat = jnp.concatenate([params["w1"], params["wr"]], axis=1)    # (in_dim, 2*out_dim)
    w2 = params["w2"]                                                 # (out_dim, out_dim)

    vec_slab = jnp.concatenate(
        [
            params["b_mlp"],                                             # row 0
            jnp.concatenate([params["b1"], params["br"]], axis=1),       # row 1
            jnp.concatenate([params["g1"], params["be1"]], axis=1),      # row 2
            jnp.concatenate([params["g2"], params["be2"]], axis=1),      # row 3
            jnp.concatenate([params["b2"],
                             jnp.zeros((1, out_dim), jnp.float32)], 1),  # row 4
            jnp.zeros((3, n2), jnp.float32),                             # pad -> 8 rows
        ],
        axis=0,
    )                                                                   # (8, 2*out_dim)

    tb = min(B, block_b)
    grid = (pl.cdiv(B, tb),)

    kernel = functools.partial(linear_resnet_block_kernel, out_dim=out_dim)

    return pl.pallas_call(
        kernel,
        out_shape=jax.ShapeDtypeStruct((B, out_dim), jnp.float32),
        grid=grid,
        in_specs=[
            pl.BlockSpec((tb, in_dim), lambda i: (i, 0)),        # x: tiled over batch
            pl.BlockSpec((tb, mlp_dim), lambda i: (i, 0)),       # time_emb: tiled over batch
            pl.BlockSpec((mlp_dim, n2), lambda i: (0, 0)),       # weights: resident
            pl.BlockSpec((in_dim, n2), lambda i: (0, 0)),
            pl.BlockSpec((out_dim, out_dim), lambda i: (0, 0)),
            pl.BlockSpec((8, n2), lambda i: (0, 0)),             # packed vector slab
        ],
        out_specs=pl.BlockSpec((tb, out_dim), lambda i: (i, 0)),
        compiler_params=pltpu.CompilerParams(
            dimension_semantics=("parallel",),                   # megacore / v7x sharding
        ),
    )(x, time_emb, w_mlp, w_xcat, w2, vec_slab)


def init_params(key, in_dim, out_dim, time_emb_dim):
    """Deterministic synthetic parameters (shapes mirror the PyTorch module)."""
    ks = jax.random.split(key, 4)
    mlp_dim = time_emb_dim  # cond_emb_dim = None

    def lin(k, fan_in, fan_out):
        kw, kb = jax.random.split(k)
        bound = 1.0 / jnp.sqrt(fan_in)
        w = jax.random.uniform(kw, (fan_in, fan_out), jnp.float32, -bound, bound)
        b = jax.random.uniform(kb, (1, fan_out), jnp.float32, -bound, bound)
        return w, b

    w_mlp, b_mlp = lin(ks[0], mlp_dim, 2 * out_dim)   # mlp Linear (kept unsplit)
    w1, b1 = lin(ks[1], in_dim, out_dim)
    w2, b2 = lin(ks[2], out_dim, out_dim)
    wr, br = lin(ks[3], in_dim, out_dim)

    ones = jnp.ones((1, out_dim), jnp.float32)
    zeros = jnp.zeros((1, out_dim), jnp.float32)
    return dict(
        w_mlp=w_mlp, b_mlp=b_mlp,
        w1=w1, b1=b1, g1=ones, be1=zeros,
        w2=w2, b2=b2, g2=ones, be2=zeros,
        wr=wr, br=br,
    )


def reference(x, emb, p):
    """Pure-JAX reference for correctness check (unfused parameters)."""
    out_dim = p["w1"].shape[1]
    e = _silu(emb)
    ss = e @ p["w_mlp"] + p["b_mlp"]
    scale, shift = ss[:, :out_dim], ss[:, out_dim:]
    h = _layernorm_ref(x @ p["w1"] + p["b1"], p["g1"], p["be1"])
    h = _silu(h * (scale + 1.0) + shift)
    h2 = _silu(_layernorm_ref(h @ p["w2"] + p["b2"], p["g2"], p["be2"]))
    return h2 + (x @ p["wr"] + p["br"])


if __name__ == "__main__":
    B, in_dim, out_dim, time_emb_dim = 8, 32, 64, 16

    key = jax.random.PRNGKey(0)
    kx, ke, kp = jax.random.split(key, 3)
    x = jax.random.normal(kx, (B, in_dim), jnp.float32)
    time_emb = jax.random.normal(ke, (B, time_emb_dim), jnp.float32)
    params = init_params(kp, in_dim, out_dim, time_emb_dim)

    out = linear_resnet_block(x, time_emb, params)
    jax.block_until_ready(out)

    ref = reference(x, time_emb, params)
    assert out.shape == (B, out_dim)
    assert jnp.allclose(out, ref, atol=1e-4, rtol=1e-4), "mismatch vs pure-JAX reference"

    print("KERNEL_OK")
</pallas_src>

<mosaic_0001>
module attributes {stable_mosaic.version = 11 : i64} {
  func.func @linear_resnet_block_kernel(%arg0: i32, %arg1: memref<8x32xf32, #tpu.memory_space<vmem>>, %arg2: memref<8x16xf32, #tpu.memory_space<vmem>>, %arg3: memref<16x128xf32, #tpu.memory_space<vmem>>, %arg4: memref<32x128xf32, #tpu.memory_space<vmem>>, %arg5: memref<64x64xf32, #tpu.memory_space<vmem>>, %arg6: memref<8x128xf32, #tpu.memory_space<vmem>>, %arg7: memref<8x64xf32, #tpu.memory_space<vmem>>) attributes {dimension_semantics = [#tpu.dimension_semantics<parallel>], iteration_bounds = array<i64: 1>, scalar_prefetch = 0 : i64, scratch_operands = 0 : i64, tpu.core_type = #tpu.core_type<tc>, window_params = [{transform_indices = @transform_0, window_bounds = array<i64: 8, 32>}, {transform_indices = @transform_1, window_bounds = array<i64: 8, 16>}, {pipeline_mode = #tpu.pipeline_mode<synchronous>, transform_indices = @transform_2, window_bounds = array<i64: 16, 128>}, {pipeline_mode = #tpu.pipeline_mode<synchronous>, transform_indices = @transform_3, window_bounds = array<i64: 32, 128>}, {pipeline_mode = #tpu.pipeline_mode<synchronous>, transform_indices = @transform_4, window_bounds = array<i64: 64, 64>}, {pipeline_mode = #tpu.pipeline_mode<synchronous>, transform_indices = @transform_5, window_bounds = array<i64: 8, 128>}, {transform_indices = @transform_6, window_bounds = array<i64: 8, 64>}]} {
    %c0 = arith.constant 0 : index
    %c0_0 = arith.constant 0 : index
    %0 = vector.load %arg1[%c0, %c0_0] : memref<8x32xf32, #tpu.memory_space<vmem>>, vector<8x32xf32>
    %c0_1 = arith.constant 0 : index
    %c0_2 = arith.constant 0 : index
    %1 = vector.load %arg2[%c0_1, %c0_2] : memref<8x16xf32, #tpu.memory_space<vmem>>, vector<8x16xf32>
    %c0_3 = arith.constant 0 : index
    %c0_4 = arith.constant 0 : index
    %2 = vector.load %arg6[%c0_3, %c0_4] : memref<8x128xf32, #tpu.memory_space<vmem>>, vector<8x128xf32>
    %3 = vector.extract_strided_slice %2 {offsets = [0, 0], sizes = [1, 128], strides = [1, 1]} : vector<8x128xf32> to vector<1x128xf32>
    %4 = vector.extract_strided_slice %2 {offsets = [1, 0], sizes = [1, 128], strides = [1, 1]} : vector<8x128xf32> to vector<1x128xf32>
    %5 = vector.extract_strided_slice %2 {offsets = [2, 0], sizes = [1, 64], strides = [1, 1]} : vector<8x128xf32> to vector<1x64xf32>
    %6 = vector.extract_strided_slice %2 {offsets = [2, 64], sizes = [1, 64], strides = [1, 1]} : vector<8x128xf32> to vector<1x64xf32>
    %7 = vector.extract_strided_slice %2 {offsets = [3, 0], sizes = [1, 64], strides = [1, 1]} : vector<8x128xf32> to vector<1x64xf32>
    %8 = vector.extract_strided_slice %2 {offsets = [3, 64], sizes = [1, 64], strides = [1, 1]} : vector<8x128xf32> to vector<1x64xf32>
    %9 = vector.extract_strided_slice %2 {offsets = [4, 0], sizes = [1, 64], strides = [1, 1]} : vector<8x128xf32> to vector<1x64xf32>
    %10 = arith.negf %1 : vector<8x16xf32>
    %11 = math.exp %10 : vector<8x16xf32>
    %cst = arith.constant 1.000000e+00 : f32
    %12 = vector.broadcast %cst : f32 to vector<8x16xf32>
    %13 = arith.addf %12, %11 : vector<8x16xf32>
    %14 = arith.divf %12, %13 : vector<8x16xf32>
    %15 = arith.mulf %1, %14 : vector<8x16xf32>
    %c0_5 = arith.constant 0 : index
    %c0_6 = arith.constant 0 : index
    %16 = vector.load %arg3[%c0_5, %c0_6] : memref<16x128xf32, #tpu.memory_space<vmem>>, vector<16x128xf32>
    %cst_7 = arith.constant dense<0.000000e+00> : vector<8x128xf32>
    %17 = tpu.matmul %15, %16, %cst_7 {dimension_numbers = #tpu.dot_dimension_numbers<[1], [0], [0], [1], [0, 0, 1, 1], [], []>} : vector<8x16xf32>, vector<16x128xf32>, vector<8x128xf32> -> vector<8x128xf32>
    %18 = vector.broadcast %3 : vector<1x128xf32> to vector<8x128xf32>
    %19 = arith.addf %17, %18 : vector<8x128xf32>
    %20 = vector.extract_strided_slice %19 {offsets = [0, 0], sizes = [8, 64], strides = [1, 1]} : vector<8x128xf32> to vector<8x64xf32>
    %21 = vector.extract_strided_slice %19 {offsets = [0, 64], sizes = [8, 64], strides = [1, 1]} : vector<8x128xf32> to vector<8x64xf32>
    %c0_8 = arith.constant 0 : index
    %c0_9 = arith.constant 0 : index
    %22 = vector.load %arg4[%c0_8, %c0_9] : memref<32x128xf32, #tpu.memory_space<vmem>>, vector<32x128xf32>
    %cst_10 = arith.constant dense<0.000000e+00> : vector<8x128xf32>
    %23 = tpu.matmul %0, %22, %cst_10 {dimension_numbers = #tpu.dot_dimension_numbers<[1], [0], [0], [1], [0, 0, 1, 1], [], []>} : vector<8x32xf32>, vector<32x128xf32>, vector<8x128xf32> -> vector<8x128xf32>
    %24 = vector.broadcast %4 : vector<1x128xf32> to vector<8x128xf32>
    %25 = arith.addf %23, %24 : vector<8x128xf32>
    %26 = vector.extract_strided_slice %25 {offsets = [0, 0], sizes = [8, 64], strides = [1, 1]} : vector<8x128xf32> to vector<8x64xf32>
    %27 = vector.extract_strided_slice %25 {offsets = [0, 64], sizes = [8, 64], strides = [1, 1]} : vector<8x128xf32> to vector<8x64xf32>
    %cst_11 = arith.constant dense<0.000000e+00> : vector<8xf32>
    %28 = vector.multi_reduction <add>, %26, %cst_11 [1] : vector<8x64xf32> to vector<8xf32>
    %29 = vector.shape_cast %28 : vector<8xf32> to vector<8x1xf32>
    %cst_12 = arith.constant 6.400000e+01 : f32
    %30 = vector.broadcast %cst_12 : f32 to vector<8x1xf32>
    %31 = arith.divf %29, %30 : vector<8x1xf32>
    %32 = arith.mulf %26, %26 : vector<8x64xf32>
    %cst_13 = arith.constant dense<0.000000e+00> : vector<8xf32>
    %33 = vector.multi_reduction <add>, %32, %cst_13 [1] : vector<8x64xf32> to vector<8xf32>
    %34 = vector.shape_cast %33 : vector<8xf32> to vector<8x1xf32>
    %cst_14 = arith.constant 6.400000e+01 : f32
    %35 = vector.broadcast %cst_14 : f32 to vector<8x1xf32>
    %36 = arith.divf %34, %35 : vector<8x1xf32>
    %37 = arith.mulf %31, %31 : vector<8x1xf32>
    %38 = arith.subf %36, %37 : vector<8x1xf32>
    %39 = vector.broadcast %31 : vector<8x1xf32> to vector<8x64xf32>
    %40 = arith.subf %26, %39 : vector<8x64xf32>
    %cst_15 = arith.constant 9.99999974E-6 : f32
    %41 = vector.broadcast %cst_15 : f32 to vector<8x1xf32>
    %42 = arith.addf %38, %41 : vector<8x1xf32>
    %43 = math.rsqrt %42 : vector<8x1xf32>
    %44 = vector.broadcast %43 : vector<8x1xf32> to vector<8x64xf32>
    %45 = arith.mulf %40, %44 : vector<8x64xf32>
    %46 = vector.broadcast %5 : vector<1x64xf32> to vector<8x64xf32>
    %47 = arith.mulf %45, %46 : vector<8x64xf32>
    %48 = vector.broadcast %6 : vector<1x64xf32> to vector<8x64xf32>
    %49 = arith.addf %47, %48 : vector<8x64xf32>
    %cst_16 = arith.constant 1.000000e+00 : f32
    %50 = vector.broadcast %cst_16 : f32 to vector<8x64xf32>
    %51 = arith.addf %20, %50 : vector<8x64xf32>
    %52 = arith.mulf %49, %51 : vector<8x64xf32>
    %53 = arith.addf %52, %21 : vector<8x64xf32>
    %54 = arith.negf %53 : vector<8x64xf32>
    %55 = math.exp %54 : vector<8x64xf32>
    %cst_17 = arith.constant 1.000000e+00 : f32
    %56 = vector.broadcast %cst_17 : f32 to vector<8x64xf32>
    %57 = arith.addf %56, %55 : vector<8x64xf32>
    %58 = arith.divf %56, %57 : vector<8x64xf32>
    %59 = arith.mulf %53, %58 : vector<8x64xf32>
    %c0_18 = arith.constant 0 : index
    %c0_19 = arith.constant 0 : index
    %60 = vector.load %arg5[%c0_18, %c0_19] : memref<64x64xf32, #tpu.memory_space<vmem>>, vector<64x64xf32>
    %cst_20 = arith.constant dense<0.000000e+00> : vector<8x64xf32>
    %61 = tpu.matmul %59, %60, %cst_20 {dimension_numbers = #tpu.dot_dimension_numbers<[1], [0], [0], [1], [0, 0, 1, 1], [], []>} : vector<8x64xf32>, vector<64x64xf32>, vector<8x64xf32> -> vector<8x64xf32>
    %62 = vector.broadcast %9 : vector<1x64xf32> to vector<8x64xf32>
    %63 = arith.addf %61, %62 : vector<8x64xf32>
    %cst_21 = arith.constant dense<0.000000e+00> : vector<8xf32>
    %64 = vector.multi_reduction <add>, %63, %cst_21 [1] : vector<8x64xf32> to vector<8xf32>
    %65 = vector.shape_cast %64 : vector<8xf32> to vector<8x1xf32>
    %cst_22 = arith.constant 6.400000e+01 : f32
    %66 = vector.broadcast %cst_22 : f32 to vector<8x1xf32>
    %67 = arith.divf %65, %66 : vector<8x1xf32>
    %68 = arith.mulf %63, %63 : vector<8x64xf32>
    %cst_23 = arith.constant dense<0.000000e+00> : vector<8xf32>
    %69 = vector.multi_reduction <add>, %68, %cst_23 [1] : vector<8x64xf32> to vector<8xf32>
    %70 = vector.shape_cast %69 : vector<8xf32> to vector<8x1xf32>
    %cst_24 = arith.constant 6.400000e+01 : f32
    %71 = vector.broadcast %cst_24 : f32 to vector<8x1xf32>
    %72 = arith.divf %70, %71 : vector<8x1xf32>
    %73 = arith.mulf %67, %67 : vector<8x1xf32>
    %74 = arith.subf %72, %73 : vector<8x1xf32>
    %75 = vector.broadcast %67 : vector<8x1xf32> to vector<8x64xf32>
    %76 = arith.subf %63, %75 : vector<8x64xf32>
    %cst_25 = arith.constant 9.99999974E-6 : f32
    %77 = vector.broadcast %cst_25 : f32 to vector<8x1xf32>
    %78 = arith.addf %74, %77 : vector<8x1xf32>
    %79 = math.rsqrt %78 : vector<8x1xf32>
    %80 = vector.broadcast %79 : vector<8x1xf32> to vector<8x64xf32>
    %81 = arith.mulf %76, %80 : vector<8x64xf32>
    %82 = vector.broadcast %7 : vector<1x64xf32> to vector<8x64xf32>
    %83 = arith.mulf %81, %82 : vector<8x64xf32>
    %84 = vector.broadcast %8 : vector<1x64xf32> to vector<8x64xf32>
    %85 = arith.addf %83, %84 : vector<8x64xf32>
    %86 = arith.negf %85 : vector<8x64xf32>
    %87 = math.exp %86 : vector<8x64xf32>
    %cst_26 = arith.constant 1.000000e+00 : f32
    %88 = vector.broadcast %cst_26 : f32 to vector<8x64xf32>
    %89 = arith.addf %88, %87 : vector<8x64xf32>
    %90 = arith.divf %88, %89 : vector<8x64xf32>
    %91 = arith.mulf %85, %90 : vector<8x64xf32>
    %92 = arith.addf %91, %27 : vector<8x64xf32>
    %c0_27 = arith.constant 0 : index
    %c0_28 = arith.constant 0 : index
    %93 = vector.load %arg7[%c0_27, %c0_28] : memref<8x64xf32, #tpu.memory_space<vmem>>, vector<8x64xf32>
    tpu.vector_store %arg7[%c0_27, %c0_28], %92 {strides = array<i32>} : memref<8x64xf32, #tpu.memory_space<vmem>>, vector<8x64xf32>,
    return
  }
  func.func @transform_0(%arg0: i32) -> (i32, i32) {
    %c0_i32 = arith.constant 0 : i32
    %c0_i32_0 = arith.constant 0 : i32
    return %arg0, %c0_i32 : i32, i32
  }
  func.func @transform_1(%arg0: i32) -> (i32, i32) {
    %c0_i32 = arith.constant 0 : i32
    %c0_i32_0 = arith.constant 0 : i32
    return %arg0, %c0_i32 : i32, i32
  }
  func.func @transform_2(%arg0: i32) -> (i32, i32) {
    %c0_i32 = arith.constant 0 : i32
    %c0_i32_0 = arith.constant 0 : i32
    %c0_i32_1 = arith.constant 0 : i32
    return %c0_i32, %c0_i32_0 : i32, i32
  }
  func.func @transform_3(%arg0: i32) -> (i32, i32) {
    %c0_i32 = arith.constant 0 : i32
    %c0_i32_0 = arith.constant 0 : i32
    %c0_i32_1 = arith.constant 0 : i32
    return %c0_i32, %c0_i32_0 : i32, i32
  }
  func.func @transform_4(%arg0: i32) -> (i32, i32) {
    %c0_i32 = arith.constant 0 : i32
    %c0_i32_0 = arith.constant 0 : i32
    %c0_i32_1 = arith.constant 0 : i32
    return %c0_i32, %c0_i32_0 : i32, i32
  }
  func.func @transform_5(%arg0: i32) -> (i32, i32) {
    %c0_i32 = arith.constant 0 : i32
    %c0_i32_0 = arith.constant 0 : i32
    %c0_i32_1 = arith.constant 0 : i32
    return %c0_i32, %c0_i32_0 : i32, i32
  }
  func.func @transform_6(%arg0: i32) -> (i32, i32) {
    %c0_i32 = arith.constant 0 : i32
    %c0_i32_0 = arith.constant 0 : i32
    return %arg0, %c0_i32 : i32, i32
  }
}

</mosaic_0001>

<bundles_post_ra>
// kernel: tpu_custom_call.1
= control target key start
LH: loop header
LB: loop body
LE: loop exit
PB: predicated region body
PF: predicated region fallthrough
CT: control target
= control target key end

     0   :  { %11 = vsyncpa [#allocation3], 0  ;;  %s866_s0 = inlined_call_operand.hbm [shape: f32[8,32], index: 0, kind: input, shape index: {}]   ;;  %s867_s1 = inlined_call_operand.hbm [shape: f32[8,16], index: 1, kind: input, shape index: {}]   ;;  %s868_s2 = inlined_call_operand.hbm [shape: f32[16,128], index: 2, kind: input, shape index: {}]   ;;  %s869_s3 = inlined_call_operand.hbm [shape: f32[32,128], index: 3, kind: input, shape index: {}]   ;;  %s870_s4 = inlined_call_operand.hbm [shape: f32[64,64], index: 4, kind: input, shape index: {}]   ;;  %s871_s5 = inlined_call_operand.vmem [shape: f32[8,128], index: 5, kind: input, shape index: {}]   ;;  %s872_s6 = inlined_call_operand.hbm [shape: f32[8,64], index: 6, kind: output, shape index: {}]  }
   0x1   :  { %12 = vsyncpa [#allocation6], 0 }
   0x2   :  { %13 = vsyncpa [#allocation9], 0 }
   0x3   :  { %14 = vsyncpa [#allocation4], 0  ;;  %s690_s21 = smov [#allocation5]   ;;  %s550_s25 = scalar_lea.hbm %s867_s1, 128 }
   0x4   :  { %s31_s22 = sshll.u32 %s690_s21, 4  ;;  %p551_p0 = scmp.ne.s32.totalorder %s867_s1, %s550_s25  ;;  %s32_s22 = int_to_ptr.vmem [resolvable:$true] %s31_s22 }
   0x5   :  { %p554_p1 = scmp.lt.u32.totalorder %s550_s25, %s867_s1 }
   0x7   :  { %p556_p2 = pnand %p554_p1, %p551_p0 }
   0x9   :  { %559 = shalt.err (!%p556_p2)
}
   0xa   :  { %s560_s30 = scalar_lea.vmem %s32_s22, 128  ;;  %p565_p4 = scmp.lt.s32.totalorder %s32_s22, %s32_s22 }
   0xb   :  { %p561_p3 = scmp.ne.s32.totalorder %s32_s22, %s560_s30  ;;  %p566_p5 = scmp.lt.s32.totalorder %s560_s30, %s560_s30 }
   0xd   :  { %p567_p6 = por %p566_p5, %p565_p4 }
   0xf   :  { %p568_p7 = pnand %p567_p6, %p561_p3 }
  0x11   :  { %571 = shalt.err (!%p568_p7)
}
  0x12   :  { %34 = dma.hbm_to_vmem [thread:$0]  %s867_s1, 128, %s32_s22, [#allocation6]  }
  0x13   :  { %s691_s9 = smov [#allocation8]   ;;  %s692_s11 = smov [#allocation2]  }
  0x14   :  { %s52_s10 = sshll.u32 %s691_s9, 4  ;;  %s21_s12 = sshll.u32 %s692_s11, 4  ;;  %s53_s10 = int_to_ptr.vmem [resolvable:$true] %s52_s10  ;;  %s22_s12 = int_to_ptr.vmem [resolvable:$true] %s21_s12 }
  0x15   :  { %s572_s15 = scalar_lea.hbm %s869_s3, 512 }
  0x16   :  { %p573_p8 = scmp.ne.s32.totalorder %s869_s3, %s572_s15  ;;  %p576_p9 = scmp.lt.u32.totalorder %s572_s15, %s869_s3 }
  0x18   :  { %p578_p10 = pnand %p576_p9, %p573_p8 }
  0x1a   :  { %581 = shalt.err (!%p578_p10)
}
  0x1b   :  { %s582_s1 = scalar_lea.vmem %s53_s10, 512  ;;  %p587_p12 = scmp.lt.s32.totalorder %s53_s10, %s53_s10 }
  0x1c   :  { %p583_p11 = scmp.ne.s32.totalorder %s53_s10, %s582_s1  ;;  %p588_p13 = scmp.lt.s32.totalorder %s582_s1, %s582_s1 }
  0x1e   :  { %p589_p0 = por %p588_p13, %p587_p12 }
  0x20   :  { %p590_p1 = pnand %p589_p0, %p583_p11 }
  0x22   :  { %593 = shalt.err (!%p590_p1)
}
  0x23   :  { %s693_s20 = smov 128   ;;  %s694_s21 = smov 8  }
  0x24   :  { %58 = dma.hbm_to_vmem [thread:$0]  %s869_s3, 512, %s53_s10, [#allocation9], %s693_s20, %s693_s20, %s694_s21  }
  0x25   :  { %s594_s26 = scalar_lea.hbm %s866_s0, 128 }
  0x26   :  { %p595_p2 = scmp.ne.s32.totalorder %s866_s0, %s594_s26  ;;  %p598_p3 = scmp.lt.u32.totalorder %s594_s26, %s866_s0 }
  0x28   :  { %p600_p4 = pnand %p598_p3, %p595_p2 }
  0x2a   :  { %603 = shalt.err (!%p600_p4)
}
  0x2b   :  { %s604_s7 = scalar_lea.vmem %s22_s12, 128  ;;  %p609_p6 = scmp.lt.s32.totalorder %s22_s12, %s22_s12 }
  0x2c   :  { %p605_p5 = scmp.ne.s32.totalorder %s22_s12, %s604_s7  ;;  %p610_p7 = scmp.lt.s32.totalorder %s604_s7, %s604_s7 }
  0x2e   :  { %p611_p8 = por %p610_p7, %p609_p6 }
  0x30   :  { %p612_p9 = pnand %p611_p8, %p605_p5 }
  0x32   :  { %615 = shalt.err (!%p612_p9)
}
  0x33   :  { %24 = dma.hbm_to_vmem [thread:$0]  %s866_s0, 128, %s22_s12, [#allocation3]  }
  0x34   :  { %s695_s9 = smov [#allocation7]   ;;  %s696_s11 = smov [#allocation10]  }
  0x35   :  { %s40_s10 = sshll.u32 %s695_s9, 4  ;;  %s64_s13 = sshll.u32 %s696_s11, 4  ;;  %s41_s10 = int_to_ptr.vmem [resolvable:$true] %s40_s10  ;;  %s65_s13 = int_to_ptr.vmem [resolvable:$true] %s64_s13 }
  0x36   :  { %s616_s16 = scalar_lea.hbm %s868_s2, 256 }
  0x37   :  { %p617_p10 = scmp.ne.s32.totalorder %s868_s2, %s616_s16  ;;  %p620_p11 = scmp.lt.u32.totalorder %s616_s16, %s868_s2 }
  0x39   :  { %p622_p12 = pnand %p620_p11, %p617_p10 }
  0x3b   :  { %625 = shalt.err (!%p622_p12)
}
  0x3c   :  { %s626_s0 = scalar_lea.vmem %s41_s10, 256  ;;  %p631_p0 = scmp.lt.s32.totalorder %s41_s10, %s41_s10 }
  0x3d   :  { %p627_p13 = scmp.ne.s32.totalorder %s41_s10, %s626_s0  ;;  %p632_p1 = scmp.lt.s32.totalorder %s626_s0, %s626_s0 }
  0x3f   :  { %p633_p2 = por %p632_p1, %p631_p0 }
  0x41   :  { %p634_p3 = pnand %p633_p2, %p627_p13 }
  0x43   :  { %637 = shalt.err (!%p634_p3)
}
  0x44   :  { %46 = dma.hbm_to_vmem [thread:$0]  %s868_s2, 256, %s41_s10, [#allocation6], %s693_s20, %s693_s20, %s694_s21  }
  0x45   :  { %s638_s25 = scalar_lea.hbm %s870_s4, 1024 }
  0x46   :  { %p639_p4 = scmp.ne.s32.totalorder %s870_s4, %s638_s25  ;;  %p642_p5 = scmp.lt.u32.totalorder %s638_s25, %s870_s4 }
  0x48   :  { %p644_p6 = pnand %p642_p5, %p639_p4 }
  0x4a   :  { %647 = shalt.err (!%p644_p6)
}
  0x4b   :  { %s648_s30 = scalar_lea.vmem %s65_s13, 1024  ;;  %p653_p8 = scmp.lt.s32.totalorder %s65_s13, %s65_s13 }
  0x4c   :  { %p649_p7 = scmp.ne.s32.totalorder %s65_s13, %s648_s30  ;;  %p654_p9 = scmp.lt.s32.totalorder %s648_s30, %s648_s30 }
  0x4e   :  { %p655_p10 = por %p654_p9, %p653_p8 }
  0x50   :  { %p656_p11 = pnand %p655_p10, %p649_p7 }
  0x52   :  { %659 = shalt.err (!%p656_p11)
}
  0x53   :  { %70 = dma.hbm_to_vmem [thread:$0]  %s870_s4, 1024, %s65_s13, [#allocation9], %s693_s20, %s693_s20, %s694_s21  }
  0x54   :  { %682 = dma.done.wait [#allocation3], 128  }
  0x55   :  { %683 = vsyncadd [#allocation3], 4294967168 }
  0x56   :  { %684 = dma.done.wait [#allocation6], 384  }
  0x57   :  { %685 = vsyncadd [#allocation6], 4294966912 }
  0x58   :  { %686 = dma.done.wait [#allocation9], 1536  }
  0x59   :  { %687 = vsyncadd [#allocation9], 4294965760  ;;  %v697_v0 = vmov 0.0|0.0   ;;  %vm698_vm0 = vmmov 0   ;;  %v699_v1 = vmov 0.0   ;;  %v100_v2 = vlaneseq  ;;  %v98_v5 = vld [vmem:[#allocation7] sm:$0xff] }
  0x5a   :  { %501 = vmatprep.subr.bf16.mxu1 %v697_v0  ;;  %468 = vmatprep.mubr.msk.f32.mxu1 %vm698_vm0, %v699_v1  ;;  %v99_v6 = vld [vmem:[#allocation7 + $0x8] sm:$0xff]  ;;  %v89_v7 = vld [vmem:[#allocation5] sm:$0xff]  ;;  %v816_v10 = vld [vmem:[%s871_s5] sm:$0xff]  ;;  %s700_s21 = smov 64   ;;  %vm104_vm1 = vcmask 130048   ;;  %vm186_vm2 = vcmask 261120  }
  0x5b   :  { %510 = vmatprep.subr.bf16.mxu0 %v697_v0  ;;  %498 = vmatprep.mubr.msk.f32.mxu0 %vm698_vm0, %v699_v1  ;;  %v810_v3 = vshrl.u32 %v100_v2, 7  ;;  %v502_v8 = vpack.c.bf16 %v99_v6, %v98_v5  ;;  %v441_v9 = vmul.f32 -1.442695, %v89_v7  ;;  %v178_v14 = vld [vmem:[#allocation8] sm:$0xff]  ;;  %v179_v15 = vld [vmem:[#allocation8 + $0x8] sm:$0xff]  ;;  %v180_v19 = vld [vmem:[#allocation8 + $0x10] sm:$0xff] }
  0x5c   :  { %v505_v17 = vpack.c.bf16 %v179_v15, %v178_v14  ;;  %v181_v20 = vld [vmem:[#allocation8 + $0x18] sm:$0xff]  ;;  %v88_v22 = vld [vmem:[#allocation2] sm:$0xff]  ;;  %vm260_vm3 = vcmask 523264   ;;  %v302_v37 = vld [vmem:[#allocation10 + $0x8] sm:$0xff]  ;;  %s701_s5 = smov [#allocation11]  }
  0x5d   :  { %v279_v4 = vsub.s32 2, %v810_v3  ;;  %503 = vmatpush3.bf16.msra.mxu1 %v502_v8  ;;  %534 = vpow2.f32 %v441_v9  ;;  %v508_v21 = vpack.c.bf16 %v181_v20, %v180_v19  ;;  %v102_v23 = vsub.s32 0, %v810_v3  ;;  %v301_v36 = vld [vmem:[#allocation10] sm:$0xff]  ;;  %v303_v38 = vld [vmem:[#allocation10 + $0x10] sm:$0xff]  ;;  %v304_v40 = vld [vmem:[#allocation10 + $0x18] sm:$0xff]  ;;  %s430_s3 = sshll.u32 %s701_s5, 4  ;;  %s431_s3 = int_to_ptr.vmem [resolvable:$true] %s430_s3 }
  0x5e   :  { %504 = vmatprep.subr.bf16.mxu1 %v697_v0  ;;  %v184_v28 = vsub.s32 1, %v810_v3  ;;  %v511_v39 = vpack.c.bf16 %v302_v37, %v301_v36  ;;  %v514_v41 = vpack.c.bf16 %v304_v40, %v303_v38  ;;  %v305_v42 = vld [vmem:[#allocation10 + $0x20] sm:$0xff]  ;;  %v306_v43 = vld [vmem:[#allocation10 + $0x28] sm:$0xff]  ;;  %v307_v45 = vld [vmem:[#allocation10 + $0x30] sm:$0xff]  ;;  %s660_s8 = scalar_lea.vmem %s431_s3, 128  ;;  %p665_p13 = scmp.lt.s32.totalorder %s431_s3, %s431_s3 }
  0x5f   :  { %v819_v11 = vrot.slane %v816_v10, %v279_v4  ;;  %v103_v24 = vrot.slane %v816_v10, %v102_v23  ;;  %v517_v44 = vpack.c.bf16 %v306_v43, %v305_v42  ;;  %v308_v46 = vld [vmem:[#allocation10 + $0x38] sm:$0xff]  ;;  %p661_p12 = scmp.ne.s32.totalorder %s431_s3, %s660_s8  ;;  %p666_p0 = scmp.lt.s32.totalorder %s660_s8, %s660_s8 }
  0x60   :  { %v185_v29 = vrot.slane %v816_v10, %v184_v28  ;;  %512 = vmatpush3.bf16.msra.mxu0 %v511_v39  ;;  %v520_v47 = vpack.c.bf16 %v308_v46, %v307_v45 }
  0x61   :  { %283 = vrot.lane.b32.xlu1 %v819_v11, %s700_s21  ;;  %513 = vmatprep.subr.bf16.mxu0 %v697_v0  ;;  %p667_p1 = por %p666_p0, %p665_p13 }
  0x63   :  { %p668_p2 = pnand %p667_p1, %p661_p12 }
  0x64   :  { %515 = vmatpush3.bf16.msra.mxu0 %v514_v41 }
  0x65   :  { %516 = vmatprep.subr.bf16.mxu0 %v697_v0 }
  0x67   :  { %v535_v12 = vpop.eup %534 }
  0x68   :  { %v94_v13 = vadd.f32 1.0, %v535_v12  ;;  %518 = vmatpush3.bf16.msra.mxu0 %v517_v44 }
  0x69   :  { %519 = vmatprep.subr.bf16.mxu0 %v697_v0 }
  0x6a   :  { %536 = vrcp.f32 %v94_v13 }
  0x6c   :  { %521 = vmatpush3.bf16.msra.mxu0 %v520_v47 }
  0x74   :  { %v537_v16 = vpop.eup %536 }
  0x75   :  { %v97_v18 = vmul.f32 %v537_v16, %v89_v7  ;;  %v311_v7 = vsub.s32 4, %v810_v3  ;;  %v403_v16 = vsub.s32 3, %v810_v3 }
  0x77   :  { %469 = vmatmul.mubr.msk.f32.vlgmr.msra.gmra.mrb[0].mxu1 %vm104_vm1, %v97_v18  ;;  %v312_v8 = vrot.slane %v816_v10, %v311_v7 }
  0x78   :  { %506 = vmatpush3.bf16.msra.mxu1 %v505_v17  ;;  %479 = vmatprep.mubr.msk.f32.mxu1 %vm698_vm0, %v699_v1  ;;  %v404_v17 = vrot.slane %v816_v10, %v403_v16 }
  0x79   :  { %507 = vmatprep.subr.bf16.mxu1 %v697_v0 }
  0x7c   :  { %509 = vmatpush3.bf16.msra.mxu1 %v508_v21 }
  0x7f   :  { %480 = vmatmul.mubr.msk.f32.vlgmr.msra.gmra.mrb[2].mxu1 %vm186_vm2, %v88_v22 }
  0xd3   :  { %v284_v58 = vpop.permute.xlu1 %283 }
 0x14a   :  { %v174_v25 = vpop.f32.mrb[0].mxu1 }
 0x14b   :  { %v175_v26 = vadd.f32 %v174_v25, %v103_v24  ;;  %v470_v27 = vpop.f32.mrb[1].mxu1 }
 0x14d   :  { %290 = vrot.lane.b32.xlu1 %v175_v26, %s700_s21  ;;  %v287_v60 = vadd.f32 1.0, %v175_v26 }
 0x152   :  { %v256_v30 = vpop.f32.mrb[2].mxu1 }
 0x153   :  { %v831_v31 = vadd.f32 %v256_v30, %v185_v29  ;;  %v481_v32 = vpop.f32.mrb[3].mxu1 }
 0x155   :  { %v261_v33 = vsel %vm260_vm3, %v831_v31, 0.0  ;;  %v266_v34 = vmul.f32 %v831_v31, %v831_v31 }
 0x156   :  { %262 = vadd.xlane.f32.xlu0 %v261_v33 }
 0x157   :  { %v267_v35 = vsel %vm260_vm3, %v266_v34, 0.0 }
 0x15a   :  { %268 = vadd.xlane.f32.xlu0 %v267_v35 }
 0x1bf   :  { %v291_v63 = vpop.permute.xlu1 %290 }
 0x1e3   :  { %v263_v48 = vpop.xlane.xlu0 %262 }
 0x1e4   :  { %v265_v49 = vmul.f32 0.015625, %v263_v48 }
 0x1e6   :  { %v271_v51 = vmul.f32 %v265_v49, %v265_v49  ;;  %v273_v55 = vsub.f32 %v831_v31, %v265_v49 }
 0x1e7   :  { %v269_v50 = vpop.xlane.xlu0 %268 }
 0x1e8   :  { %v270_v52 = vmul.f32 0.015625, %v269_v50 }
 0x1ea   :  { %v272_v53 = vsub.f32 %v270_v52, %v271_v51 }
 0x1ec   :  { %v274_v54 = vadd.f32 1e-05, %v272_v53 }
 0x1ee   :  { %538 = vrsqrt.f32 %v274_v54 }
 0x1f8   :  { %v539_v56 = vpop.eup %538 }
 0x1f9   :  { %v276_v57 = vmul.f32 %v539_v56, %v273_v55 }
 0x1fb   :  { %v281_v59 = vmul.f32 %v819_v11, %v276_v57 }
 0x1fd   :  { %v286_v61 = vadd.f32 %v284_v58, %v281_v59 }
 0x1ff   :  { %v288_v62 = vmul.f32 %v287_v60, %v286_v61 }
 0x201   :  { %v293_v0 = vadd.f32 %v291_v63, %v288_v62 }
 0x203   :  { %v444_v1 = vmul.f32 -1.442695, %v293_v0 }
 0x205   :  { %540 = vpow2.f32 %v444_v1 }
 0x20f   :  { %v541_v2 = vpop.eup %540 }
 0x210   :  { %v297_v4 = vadd.f32 1.0, %v541_v2 }
 0x212   :  { %542 = vrcp.f32 %v297_v4 }
 0x21c   :  { %v543_v5 = vpop.eup %542 }
 0x21d   :  { %v300_v6 = vmul.f32 %v543_v5, %v293_v0 }
 0x21f   :  { %499 = vmatmul.mubr.msk.f32.vlgmr.msra.gmra.mrb[0].mxu0 %vm260_vm3, %v300_v6 }
 0x2f2   :  { %v382_v9 = vpop.f32.mrb[0].mxu0 }
 0x2f3   :  { %v383_v11 = vadd.f32 %v382_v9, %v312_v8  ;;  %v500_v12 = vpop.f32.mrb[1].mxu0 }
 0x2f5   :  { %v386_v13 = vsel %vm260_vm3, %v383_v11, 0.0  ;;  %v390_v14 = vmul.f32 %v383_v11, %v383_v11 }
 0x2f6   :  { %387 = vadd.xlane.f32.xlu0 %v386_v13 }
 0x2f7   :  { %v391_v15 = vsel %vm260_vm3, %v390_v14, 0.0 }
 0x2f8   :  { %392 = vadd.xlane.f32.xlu1 %v391_v15 }
 0x30c   :  { %407 = vrot.lane.b32.xlu0 %v404_v17, %s700_s21 }
 0x310   :  { %419 = vrot.lane.b32.xlu0 %v831_v31, %s700_s21 }
 0x383   :  { %v388_v18 = vpop.xlane.xlu0 %387 }
 0x384   :  { %v389_v19 = vmul.f32 0.015625, %v388_v18 }
 0x385   :  { %v393_v20 = vpop.xlane.xlu1 %392 }
 0x386   :  { %v395_v21 = vmul.f32 %v389_v19, %v389_v19  ;;  %v394_v22 = vmul.f32 0.015625, %v393_v20  ;;  %v397_v25 = vsub.f32 %v383_v11, %v389_v19 }
 0x387   :  { %v408_v3 = vpop.permute.xlu0 %407 }
 0x388   :  { %v396_v23 = vsub.f32 %v394_v22, %v395_v21 }
 0x38a   :  { %v398_v24 = vadd.f32 1e-05, %v396_v23 }
 0x38b   :  { %v420_v34 = vpop.permute.xlu0 %419 }
 0x38c   :  { %544 = vrsqrt.f32 %v398_v24 }
 0x396   :  { %v545_v26 = vpop.eup %544 }
 0x397   :  { %v400_v27 = vmul.f32 %v545_v26, %v397_v25 }
 0x399   :  { %v405_v28 = vmul.f32 %v404_v17, %v400_v27 }
 0x39b   :  { %v410_v29 = vadd.f32 %v408_v3, %v405_v28 }
 0x39d   :  { %v446_v10 = vmul.f32 -1.442695, %v410_v29 }
 0x39f   :  { %546 = vpow2.f32 %v446_v10 }
 0x3a9   :  { %v547_v30 = vpop.eup %546 }
 0x3aa   :  { %v414_v32 = vadd.f32 1.0, %v547_v30 }
 0x3ac   :  { %548 = vrcp.f32 %v414_v32 }
 0x3b6   :  { %v549_v31 = vpop.eup %548 }
 0x3b7   :  { %v417_v33 = vmul.f32 %v549_v31, %v410_v29 }
 0x3b9   :  { %v422_v35 = vadd.f32 %v420_v34, %v417_v33 }
 0x3bb   :  { %423 = vst.msk [vmem:[#allocation11] sm:$0xff] %vm260_vm3, %v422_v35 }
 0x3bc   :  { %671 = shalt.err (!%p668_p2)
}
 0x3bd   :  { %s672_s11 = scalar_lea.hbm %s872_s6, 128 }
 0x3be   :  { %p673_p3 = scmp.ne.s32.totalorder %s872_s6, %s672_s11  ;;  %p676_p4 = scmp.lt.u32.totalorder %s672_s11, %s872_s6 }
 0x3c0   :  { %p678_p5 = pnand %p676_p4, %p673_p3 }
 0x3c2   :  { %681 = shalt.err (!%p678_p5)
}
 0x3c3   :  { %433 = dma.vmem_to_hbm [thread:$0]  %s431_s3, 128, %s872_s6, [#allocation4]  }
 0x3c4   :  { %688 = dma.done.wait [#allocation4], 128  }
 0x3c5   :  { %689 = vsyncadd [#allocation4], 4294967168 }
 0x3c6   :  { %437 = vsyncpa [#allocation3], 1 }
 0x3c7   :  { %438 = vsyncpa [#allocation6], 1 }
 0x3c8   :  { %439 = vsyncpa [#allocation9], 1 }
 0x3c9   :  { %440 = vsyncpa [#allocation4], 1 }

</bundles_post_ra>
